<compile_context>
chip_gen: v7x
topology: tpu7x:2x2x1
jax: 0.10.0
libtpu: 0.0.40
codegen_flags: <defaults>
</compile_context>

<pallas_src>
import functools
from typing import Sequence

import jax
import jax.numpy as jnp
from jax.experimental import pallas as pl
from jax.experimental.pallas import tpu as pltpu


def _round_up(x: int, m: int) -> int:
    return (x + m - 1) // m * m


def _mlp_fused_kernel(x_ref, *refs, n_layers: int, activations: tuple):
    """One batch-tile of the whole MLP. refs = (w0,b0,w1,b1,...,o_ref)."""
    o_ref = refs[-1]
    h = x_ref[...].astype(jnp.float32)            # (TB, D0_pad) f32
    for li in range(n_layers):
        w = refs[2 * li][...]                     # (Din_pad, Dout_pad) bf16
        b = refs[2 * li + 1][...]                 # (1, Dout_pad)       bf16
        # bf16 operands into the MXU, f32 accumulation.
        y = jnp.dot(h.astype(w.dtype), w, preferred_element_type=jnp.float32)
        y = y + b.astype(jnp.float32)             # VPU, co-issues under MXU
        if activations[li]:
            y = jnp.maximum(y, 0.0)
        h = y
    o_ref[...] = h.astype(o_ref.dtype)


class MLP:
    """JAX/Pallas port of the PyTorch MLP: Linear(+ReLU) stack, fused kernel."""

    def __init__(self, input_dim: int, output_dim: int,
                 hidden_sizes: Sequence[int], activate_last: bool = False,
                 key: jax.Array = None, param_dtype=jnp.bfloat16):
        dims = tuple(hidden_sizes) + (output_dim,)
        n_layers = len(dims)
        if key is None:
            key = jax.random.PRNGKey(0)

        self.input_dim = input_dim
        self.output_dim = output_dim
        self.layer_dims = []          # (din, dout) logical per layer
        self.padded_params = []       # (w_pad, b_pad) per layer, zero-padded
        self.activations = []

        prev_dim = input_dim
        for ii, dim in enumerate(dims):
            key, kw, kb = jax.random.split(key, 3)
            # nn.Linear default init: U(-1/sqrt(in), 1/sqrt(in))
            bound = 1.0 / (prev_dim ** 0.5)
            w = jax.random.uniform(kw, (prev_dim, dim), jnp.float32, -bound, bound)
            b = jax.random.uniform(kb, (1, dim), jnp.float32, -bound, bound)

            din_pad = _round_up(prev_dim, 128)
            dout_pad = _round_up(dim, 128)
            w_pad = jnp.zeros((din_pad, dout_pad), jnp.float32).at[:prev_dim, :dim].set(w)
            b_pad = jnp.zeros((1, dout_pad), jnp.float32).at[:, :dim].set(b)

            self.padded_params.append((w_pad.astype(param_dtype),
                                       b_pad.astype(param_dtype)))
            self.layer_dims.append((prev_dim, dim))
            self.activations.append(ii < n_layers - 1 or activate_last)
            prev_dim = dim

        self.n_layers = n_layers

    def __call__(self, x: jax.Array) -> jax.Array:
        B, din = x.shape
        assert din == self.input_dim, (din, self.input_dim)

        din_pad = self.padded_params[0][0].shape[0]
        dout_pad = self.padded_params[-1][0].shape[1]

        # Batch tiling: tile of up to 128 rows, padded to sublane multiple (8).
        tb = min(128, _round_up(B, 8))
        b_pad = _round_up(B, tb)
        x_pad = jnp.zeros((b_pad, din_pad), jnp.float32)
        x_pad = x_pad.at[:B, :din].set(x.astype(jnp.float32))

        flat_params = [t for wb in self.padded_params for t in wb]

        in_specs = [pl.BlockSpec((tb, din_pad), lambda i: (i, 0))]
        for w, b in self.padded_params:
            in_specs.append(pl.BlockSpec(w.shape, lambda i: (0, 0)))
            in_specs.append(pl.BlockSpec(b.shape, lambda i: (0, 0)))

        kernel = functools.partial(
            _mlp_fused_kernel,
            n_layers=self.n_layers,
            activations=tuple(self.activations),
        )

        out_pad = pl.pallas_call(
            kernel,
            out_shape=jax.ShapeDtypeStruct((b_pad, dout_pad), jnp.float32),
            grid=(b_pad // tb,),
            in_specs=in_specs,
            out_specs=pl.BlockSpec((tb, dout_pad), lambda i: (i, 0)),
            compiler_params=pltpu.CompilerParams(
                dimension_semantics=("parallel",)),
        )(x_pad, *flat_params)

        return out_pad[:B, :self.output_dim]


def _reference(mlp: MLP, x: jax.Array) -> jax.Array:
    """Plain-JAX reference using the same stored (bf16) parameters."""
    h = x.astype(jnp.float32)
    for (w_pad, b_pad), (din, dout), act in zip(
            mlp.padded_params, mlp.layer_dims, mlp.activations):
        w = w_pad[:din, :dout]
        b = b_pad[:, :dout]
        h = jnp.dot(h.astype(w.dtype), w, preferred_element_type=jnp.float32)
        h = h + b.astype(jnp.float32)
        if act:
            h = jnp.maximum(h, 0.0)
    return h


if __name__ == "__main__":
    key = jax.random.PRNGKey(0)
    key, kx, kp = jax.random.split(key, 3)

    batch = 8
    input_dim = 32
    hidden_sizes = (64, 48)
    output_dim = 16

    x = jax.random.normal(kx, (batch, input_dim), jnp.float32)
    mlp = MLP(input_dim, output_dim, hidden_sizes, activate_last=False, key=kp)

    out = mlp(x)
    out = jax.block_until_ready(out)

    ref = _reference(mlp, x)
    assert out.shape == (batch, output_dim), out.shape
    assert jnp.allclose(out, ref, atol=1e-2, rtol=1e-2), "mismatch vs reference"

    print("KERNEL_OK")
</pallas_src>

<mosaic_0001>
module attributes {stable_mosaic.version = 11 : i64} {
  func.func @_mlp_fused_kernel(%arg0: i32, %arg1: memref<8x128xf32, #tpu.memory_space<vmem>>, %arg2: memref<128x128xbf16, #tpu.memory_space<vmem>>, %arg3: memref<1x128xbf16, #tpu.memory_space<vmem>>, %arg4: memref<128x128xbf16, #tpu.memory_space<vmem>>, %arg5: memref<1x128xbf16, #tpu.memory_space<vmem>>, %arg6: memref<128x128xbf16, #tpu.memory_space<vmem>>, %arg7: memref<1x128xbf16, #tpu.memory_space<vmem>>, %arg8: memref<8x128xf32, #tpu.memory_space<vmem>>) attributes {dimension_semantics = [#tpu.dimension_semantics<parallel>], iteration_bounds = array<i64: 1>, scalar_prefetch = 0 : i64, scratch_operands = 0 : i64, tpu.core_type = #tpu.core_type<tc>, window_params = [{transform_indices = @transform_0, window_bounds = array<i64: 8, 128>}, {pipeline_mode = #tpu.pipeline_mode<synchronous>, transform_indices = @transform_1, window_bounds = array<i64: 128, 128>}, {pipeline_mode = #tpu.pipeline_mode<synchronous>, transform_indices = @transform_2, window_bounds = array<i64: 1, 128>}, {pipeline_mode = #tpu.pipeline_mode<synchronous>, transform_indices = @transform_3, window_bounds = array<i64: 128, 128>}, {pipeline_mode = #tpu.pipeline_mode<synchronous>, transform_indices = @transform_4, window_bounds = array<i64: 1, 128>}, {pipeline_mode = #tpu.pipeline_mode<synchronous>, transform_indices = @transform_5, window_bounds = array<i64: 128, 128>}, {pipeline_mode = #tpu.pipeline_mode<synchronous>, transform_indices = @transform_6, window_bounds = array<i64: 1, 128>}, {transform_indices = @transform_7, window_bounds = array<i64: 8, 128>}]} {
    %c0 = arith.constant 0 : index
    %c0_0 = arith.constant 0 : index
    %0 = vector.load %arg1[%c0, %c0_0] : memref<8x128xf32, #tpu.memory_space<vmem>>, vector<8x128xf32>
    %c0_1 = arith.constant 0 : index
    %c0_2 = arith.constant 0 : index
    %1 = vector.load %arg2[%c0_1, %c0_2] : memref<128x128xbf16, #tpu.memory_space<vmem>>, vector<128x128xbf16>
    %c0_3 = arith.constant 0 : index
    %c0_4 = arith.constant 0 : index
    %2 = vector.load %arg3[%c0_3, %c0_4] : memref<1x128xbf16, #tpu.memory_space<vmem>>, vector<1x128xbf16>
    %3 = arith.truncf %0 : vector<8x128xf32> to vector<8x128xbf16>
    %cst = arith.constant dense<0.000000e+00> : vector<8x128xf32>
    %4 = tpu.matmul %3, %1, %cst {dimension_numbers = #tpu.dot_dimension_numbers<[1], [0], [0], [1], [0, 0, 1, 1], [], []>} : vector<8x128xbf16>, vector<128x128xbf16>, vector<8x128xf32> -> vector<8x128xf32>
    %5 = arith.extf %2 : vector<1x128xbf16> to vector<1x128xf32>
    %6 = vector.broadcast %5 : vector<1x128xf32> to vector<8x128xf32>
    %7 = arith.addf %4, %6 : vector<8x128xf32>
    %cst_5 = arith.constant 0.000000e+00 : f32
    %8 = vector.broadcast %cst_5 : f32 to vector<8x128xf32>
    %9 = arith.maximumf %7, %8 : vector<8x128xf32>
    %c0_6 = arith.constant 0 : index
    %c0_7 = arith.constant 0 : index
    %10 = vector.load %arg4[%c0_6, %c0_7] : memref<128x128xbf16, #tpu.memory_space<vmem>>, vector<128x128xbf16>
    %c0_8 = arith.constant 0 : index
    %c0_9 = arith.constant 0 : index
    %11 = vector.load %arg5[%c0_8, %c0_9] : memref<1x128xbf16, #tpu.memory_space<vmem>>, vector<1x128xbf16>
    %12 = arith.truncf %9 : vector<8x128xf32> to vector<8x128xbf16>
    %cst_10 = arith.constant dense<0.000000e+00> : vector<8x128xf32>
    %13 = tpu.matmul %12, %10, %cst_10 {dimension_numbers = #tpu.dot_dimension_numbers<[1], [0], [0], [1], [0, 0, 1, 1], [], []>} : vector<8x128xbf16>, vector<128x128xbf16>, vector<8x128xf32> -> vector<8x128xf32>
    %14 = arith.extf %11 : vector<1x128xbf16> to vector<1x128xf32>
    %15 = vector.broadcast %14 : vector<1x128xf32> to vector<8x128xf32>
    %16 = arith.addf %13, %15 : vector<8x128xf32>
    %cst_11 = arith.constant 0.000000e+00 : f32
    %17 = vector.broadcast %cst_11 : f32 to vector<8x128xf32>
    %18 = arith.maximumf %16, %17 : vector<8x128xf32>
    %c0_12 = arith.constant 0 : index
    %c0_13 = arith.constant 0 : index
    %19 = vector.load %arg6[%c0_12, %c0_13] : memref<128x128xbf16, #tpu.memory_space<vmem>>, vector<128x128xbf16>
    %c0_14 = arith.constant 0 : index
    %c0_15 = arith.constant 0 : index
    %20 = vector.load %arg7[%c0_14, %c0_15] : memref<1x128xbf16, #tpu.memory_space<vmem>>, vector<1x128xbf16>
    %21 = arith.truncf %18 : vector<8x128xf32> to vector<8x128xbf16>
    %cst_16 = arith.constant dense<0.000000e+00> : vector<8x128xf32>
    %22 = tpu.matmul %21, %19, %cst_16 {dimension_numbers = #tpu.dot_dimension_numbers<[1], [0], [0], [1], [0, 0, 1, 1], [], []>} : vector<8x128xbf16>, vector<128x128xbf16>, vector<8x128xf32> -> vector<8x128xf32>
    %23 = arith.extf %20 : vector<1x128xbf16> to vector<1x128xf32>
    %24 = vector.broadcast %23 : vector<1x128xf32> to vector<8x128xf32>
    %25 = arith.addf %22, %24 : vector<8x128xf32>
    %c0_17 = arith.constant 0 : index
    %c0_18 = arith.constant 0 : index
    %26 = vector.load %arg8[%c0_17, %c0_18] : memref<8x128xf32, #tpu.memory_space<vmem>>, vector<8x128xf32>
    tpu.vector_store %arg8[%c0_17, %c0_18], %25 {strides = array<i32>} : memref<8x128xf32, #tpu.memory_space<vmem>>, vector<8x128xf32>,
    return
  }
  func.func @transform_0(%arg0: i32) -> (i32, i32) {
    %c0_i32 = arith.constant 0 : i32
    %c0_i32_0 = arith.constant 0 : i32
    return %arg0, %c0_i32 : i32, i32
  }
  func.func @transform_1(%arg0: i32) -> (i32, i32) {
    %c0_i32 = arith.constant 0 : i32
    %c0_i32_0 = arith.constant 0 : i32
    %c0_i32_1 = arith.constant 0 : i32
    return %c0_i32, %c0_i32_0 : i32, i32
  }
  func.func @transform_2(%arg0: i32) -> (i32, i32) {
    %c0_i32 = arith.constant 0 : i32
    %c0_i32_0 = arith.constant 0 : i32
    %c0_i32_1 = arith.constant 0 : i32
    return %c0_i32, %c0_i32_0 : i32, i32
  }
  func.func @transform_3(%arg0: i32) -> (i32, i32) {
    %c0_i32 = arith.constant 0 : i32
    %c0_i32_0 = arith.constant 0 : i32
    %c0_i32_1 = arith.constant 0 : i32
    return %c0_i32, %c0_i32_0 : i32, i32
  }
  func.func @transform_4(%arg0: i32) -> (i32, i32) {
    %c0_i32 = arith.constant 0 : i32
    %c0_i32_0 = arith.constant 0 : i32
    %c0_i32_1 = arith.constant 0 : i32
    return %c0_i32, %c0_i32_0 : i32, i32
  }
  func.func @transform_5(%arg0: i32) -> (i32, i32) {
    %c0_i32 = arith.constant 0 : i32
    %c0_i32_0 = arith.constant 0 : i32
    %c0_i32_1 = arith.constant 0 : i32
    return %c0_i32, %c0_i32_0 : i32, i32
  }
  func.func @transform_6(%arg0: i32) -> (i32, i32) {
    %c0_i32 = arith.constant 0 : i32
    %c0_i32_0 = arith.constant 0 : i32
    %c0_i32_1 = arith.constant 0 : i32
    return %c0_i32, %c0_i32_0 : i32, i32
  }
  func.func @transform_7(%arg0: i32) -> (i32, i32) {
    %c0_i32 = arith.constant 0 : i32
    %c0_i32_0 = arith.constant 0 : i32
    return %arg0, %c0_i32 : i32, i32
  }
}

</mosaic_0001>

<bundles_post_ra>
// kernel: tpu_custom_call.1
= control target key start
LH: loop header
LB: loop body
LE: loop exit
PB: predicated region body
PF: predicated region fallthrough
CT: control target
= control target key end

     0   :  { %12 = vsyncpa [#allocation3], 0  ;;  %s854_s0 = inlined_call_operand.hbm [shape: f32[8,128], index: 0, kind: input, shape index: {}]   ;;  %s855_s1 = inlined_call_operand.hbm [shape: bf16[128,128], index: 1, kind: input, shape index: {}]   ;;  %s856_s2 = inlined_call_operand.vmem [shape: bf16[1,128], index: 2, kind: input, shape index: {}]   ;;  %s857_s3 = inlined_call_operand.hbm [shape: bf16[128,128], index: 3, kind: input, shape index: {}]   ;;  %s858_s4 = inlined_call_operand.vmem [shape: bf16[1,128], index: 4, kind: input, shape index: {}]   ;;  %s859_s5 = inlined_call_operand.hbm [shape: bf16[128,128], index: 5, kind: input, shape index: {}]   ;;  %s860_s6 = inlined_call_operand.vmem [shape: bf16[1,128], index: 6, kind: input, shape index: {}]   ;;  %s861_s7 = inlined_call_operand.hbm [shape: f32[8,128], index: 7, kind: output, shape index: {}]  }
   0x1   :  { %13 = vsyncpa [#allocation6], 0 }
   0x2   :  { %14 = vsyncpa [#allocation9], 0 }
   0x3   :  { %15 = vsyncpa [#allocation4], 0  ;;  %s697_s24 = smov [#allocation5]   ;;  %s579_s28 = scalar_lea.hbm %s855_s1, 1024 }
   0x4   :  { %s31_s25 = sshll.u32 %s697_s24, 4  ;;  %p580_p0 = scmp.ne.s32.totalorder %s855_s1, %s579_s28  ;;  %s32_s25 = int_to_ptr.vmem [resolvable:$true] %s31_s25 }
   0x5   :  { %p583_p1 = scmp.lt.u32.totalorder %s579_s28, %s855_s1 }
   0x7   :  { %p585_p2 = pnand %p583_p1, %p580_p0 }
   0x9   :  { %588 = shalt.err (!%p585_p2)
}
   0xa   :  { %s589_s10 = scalar_lea.vmem %s32_s25, 1024  ;;  %p594_p4 = scmp.lt.s32.totalorder %s32_s25, %s32_s25 }
   0xb   :  { %p590_p3 = scmp.ne.s32.totalorder %s32_s25, %s589_s10  ;;  %p595_p5 = scmp.lt.s32.totalorder %s589_s10, %s589_s10 }
   0xd   :  { %p596_p6 = por %p595_p5, %p594_p4 }
   0xf   :  { %p597_p7 = pnand %p596_p6, %p590_p3 }
  0x11   :  { %600 = shalt.err (!%p597_p7)
}
  0x12   :  { %s698_s11 = smov 64   ;;  %s699_s12 = smov 4  }
  0x13   :  { %37 = dma.hbm_to_vmem [thread:$0]  %s855_s1, 1024, %s32_s25, [#allocation6], %s698_s11, %s698_s11, %s699_s12  }
  0x14   :  { %s700_s15 = smov [#allocation2]   ;;  %s701_s17 = smov [#allocation7]  }
  0x15   :  { %s22_s16 = sshll.u32 %s700_s15, 4  ;;  %s45_s18 = sshll.u32 %s701_s17, 4  ;;  %s23_s16 = int_to_ptr.vmem [resolvable:$true] %s22_s16  ;;  %s46_s18 = int_to_ptr.vmem [resolvable:$true] %s45_s18 }
  0x16   :  { %s601_s21 = scalar_lea.hbm %s854_s0, 128 }
  0x17   :  { %p602_p8 = scmp.ne.s32.totalorder %s854_s0, %s601_s21  ;;  %p605_p9 = scmp.lt.u32.totalorder %s601_s21, %s854_s0 }
  0x19   :  { %p607_p10 = pnand %p605_p9, %p602_p8 }
  0x1b   :  { %610 = shalt.err (!%p607_p10)
}
  0x1c   :  { %s611_s1 = scalar_lea.vmem %s23_s16, 128  ;;  %p616_p12 = scmp.lt.s32.totalorder %s23_s16, %s23_s16 }
  0x1d   :  { %p612_p11 = scmp.ne.s32.totalorder %s23_s16, %s611_s1  ;;  %p617_p13 = scmp.lt.s32.totalorder %s611_s1, %s611_s1 }
  0x1f   :  { %p618_p0 = por %p617_p13, %p616_p12 }
  0x21   :  { %p619_p1 = pnand %p618_p0, %p612_p11 }
  0x23   :  { %622 = shalt.err (!%p619_p1)
}
  0x24   :  { %25 = dma.hbm_to_vmem [thread:$0]  %s854_s0, 128, %s23_s16, [#allocation3]  }
  0x25   :  { %s623_s30 = scalar_lea.hbm %s857_s3, 1024 }
  0x26   :  { %p624_p2 = scmp.ne.s32.totalorder %s857_s3, %s623_s30  ;;  %p627_p3 = scmp.lt.u32.totalorder %s623_s30, %s857_s3 }
  0x28   :  { %p629_p4 = pnand %p627_p3, %p624_p2 }
  0x2a   :  { %632 = shalt.err (!%p629_p4)
}
  0x2b   :  { %s633_s14 = scalar_lea.vmem %s46_s18, 1024  ;;  %p638_p6 = scmp.lt.s32.totalorder %s46_s18, %s46_s18 }
  0x2c   :  { %p634_p5 = scmp.ne.s32.totalorder %s46_s18, %s633_s14  ;;  %p639_p7 = scmp.lt.s32.totalorder %s633_s14, %s633_s14 }
  0x2e   :  { %p640_p8 = por %p639_p7, %p638_p6 }
  0x30   :  { %p641_p9 = pnand %p640_p8, %p634_p5 }
  0x32   :  { %644 = shalt.err (!%p641_p9)
}
  0x33   :  { %51 = dma.hbm_to_vmem [thread:$0]  %s857_s3, 1024, %s46_s18, [#allocation6], %s698_s11, %s698_s11, %s699_s12  }
  0x34   :  { %s702_s16 = smov [#allocation8]   ;;  %s645_s21 = scalar_lea.hbm %s859_s5, 1024 }
  0x35   :  { %s59_s17 = sshll.u32 %s702_s16, 4  ;;  %p646_p10 = scmp.ne.s32.totalorder %s859_s5, %s645_s21  ;;  %s60_s17 = int_to_ptr.vmem [resolvable:$true] %s59_s17 }
  0x36   :  { %p649_p11 = scmp.lt.u32.totalorder %s645_s21, %s859_s5 }
  0x38   :  { %p651_p12 = pnand %p649_p11, %p646_p10 }
  0x3a   :  { %654 = shalt.err (!%p651_p12)
}
  0x3b   :  { %s655_s1 = scalar_lea.vmem %s60_s17, 1024  ;;  %p660_p0 = scmp.lt.s32.totalorder %s60_s17, %s60_s17 }
  0x3c   :  { %p656_p13 = scmp.ne.s32.totalorder %s60_s17, %s655_s1  ;;  %p661_p1 = scmp.lt.s32.totalorder %s655_s1, %s655_s1 }
  0x3e   :  { %p662_p2 = por %p661_p1, %p660_p0 }
  0x40   :  { %p663_p3 = pnand %p662_p2, %p656_p13 }
  0x42   :  { %666 = shalt.err (!%p663_p3)
}
  0x43   :  { %65 = dma.hbm_to_vmem [thread:$0]  %s859_s5, 1024, %s60_s17, [#allocation9], %s698_s11, %s698_s11, %s699_s12  }
  0x44   :  { %689 = dma.done.wait [#allocation3], 128  }
  0x45   :  { %690 = vsyncadd [#allocation3], 4294967168 }
  0x46   :  { %691 = dma.done.wait [#allocation6], 2048  }
  0x47   :  { %692 = vsyncadd [#allocation6], 4294965248 }
  0x48   :  { %693 = dma.done.wait [#allocation9], 1024  }
  0x49   :  { %694 = vsyncadd [#allocation9], 4294966272  ;;  %v703_v0 = vmov 0.0   ;;  %vm704_vm0 = vmmov 0   ;;  %v555_v1 = vld [vmem:[#allocation5] sm:$0xff]   ;;  %v556_v2 = vld [vmem:[#allocation5 + $0x8] sm:$0xff]   ;;  %v101_v25 = vlaneseq }
  0x4a   :  { %486 = vmatprep.subr.bf16.mxu0 %v703_v0  ;;  %502 = vmatprep.mubr.msk.bf16.mxu0 %vm704_vm0, %v703_v0  ;;  %v557_v3 = vld [vmem:[#allocation5 + $0x10] sm:$0xff]   ;;  %v563_v4 = vld [vmem:[#allocation7] sm:$0xff]   ;;  %v558_v5 = vld [vmem:[#allocation5 + $0x18] sm:$0xff]   ;;  %s705_s28 = smov [#allocation10]  }
  0x4b   :  { %506 = vmatprep.subr.bf16.mxu1 %v703_v0  ;;  %522 = vmatprep.mubr.msk.bf16.mxu1 %vm704_vm0, %v703_v0  ;;  %v564_v6 = vld [vmem:[#allocation7 + $0x8] sm:$0xff]   ;;  %v559_v7 = vld [vmem:[#allocation5 + $0x20] sm:$0xff]   ;;  %v565_v8 = vld [vmem:[#allocation7 + $0x10] sm:$0xff]   ;;  %v102_v26 = vshrl.u32 %v101_v25, 7  ;;  %s424_s29 = sshll.u32 %s705_s28, 4  ;;  %s425_s29 = int_to_ptr.vmem [resolvable:$true] %s424_s29 }
  0x4c   :  { %487 = vmatpush3.bf16.msra.mxu0 %v555_v1  ;;  %507 = vmatpush3.bf16.msra.mxu1 %v563_v4  ;;  %v560_v9 = vld [vmem:[#allocation5 + $0x28] sm:$0xff]   ;;  %v566_v10 = vld [vmem:[#allocation7 + $0x18] sm:$0xff]   ;;  %v561_v11 = vld [vmem:[#allocation5 + $0x30] sm:$0xff]   ;;  %p672_p5 = scmp.lt.s32.totalorder %s425_s29, %s425_s29 }
  0x4d   :  { %488 = vmatprep.subr.bf16.mxu0 %v703_v0  ;;  %508 = vmatprep.subr.bf16.mxu1 %v703_v0  ;;  %v567_v12 = vld [vmem:[#allocation7 + $0x20] sm:$0xff]   ;;  %v562_v13 = vld [vmem:[#allocation5 + $0x38] sm:$0xff]   ;;  %v568_v15 = vld [vmem:[#allocation7 + $0x28] sm:$0xff]   ;;  %v103_v29 = vsub.s32 0, %v102_v26 }
  0x4e   :  { %v81_v14 = vld [vmem:[#allocation2] sm:$0xff]  ;;  %v569_v17 = vld [vmem:[#allocation7 + $0x30] sm:$0xff]   ;;  %v571_v19 = vld [vmem:[#allocation8] sm:$0xff]  }
  0x4f   :  { %v99_v16 = vpack.c.bf16 %v81_v14, %v81_v14  ;;  %v570_v18 = vld [vmem:[#allocation7 + $0x38] sm:$0xff]   ;;  %v572_v20 = vld [vmem:[#allocation8 + $0x8] sm:$0xff]   ;;  %v573_v21 = vld [vmem:[#allocation8 + $0x10] sm:$0xff]  }
  0x50   :  { %489 = vmatpush3.bf16.msra.mxu0 %v556_v2  ;;  %509 = vmatpush3.bf16.msra.mxu1 %v564_v6  ;;  %v574_v22 = vld [vmem:[#allocation8 + $0x18] sm:$0xff]   ;;  %v575_v23 = vld [vmem:[#allocation8 + $0x20] sm:$0xff]   ;;  %v576_v24 = vld [vmem:[#allocation8 + $0x28] sm:$0xff]  }
  0x51   :  { %490 = vmatprep.subr.bf16.mxu0 %v703_v0  ;;  %510 = vmatprep.subr.bf16.mxu1 %v703_v0  ;;  %v98_v27 = vld [vmem:[%s856_s2] sm:$0x1]  ;;  %v577_v38 = vld [vmem:[#allocation8 + $0x30] sm:$0xff]  }
  0x52   :  { %v100_v28 = vunpack.c.l.bf16 %v98_v27  ;;  %v578_v39 = vld [vmem:[#allocation8 + $0x38] sm:$0xff]  }
  0x53   :  { %v210_v40 = vld [vmem:[%s858_s4] sm:$0x1]  ;;  %s667_s4 = scalar_lea.vmem %s425_s29, 128 }
  0x54   :  { %491 = vmatpush3.bf16.msra.mxu0 %v557_v3  ;;  %511 = vmatpush3.bf16.msra.mxu1 %v565_v8  ;;  %v104_v30 = vrot.slane %v100_v28, %v103_v29  ;;  %v212_v41 = vunpack.c.l.bf16 %v210_v40  ;;  %v322_v50 = vld [vmem:[%s860_s6] sm:$0x1]  ;;  %p668_p4 = scmp.ne.s32.totalorder %s425_s29, %s667_s4  ;;  %p673_p6 = scmp.lt.s32.totalorder %s667_s4, %s667_s4 }
  0x55   :  { %492 = vmatprep.subr.bf16.mxu0 %v703_v0  ;;  %512 = vmatprep.subr.bf16.mxu1 %v703_v0  ;;  %v324_v51 = vunpack.c.l.bf16 %v322_v50 }
  0x56   :  { %v216_v42 = vrot.slane %v212_v41, %v103_v29  ;;  %p674_p7 = por %p673_p6, %p672_p5 }
  0x57   :  { %v328_v52 = vrot.slane %v324_v51, %v103_v29 }
  0x58   :  { %493 = vmatpush3.bf16.msra.mxu0 %v558_v5  ;;  %513 = vmatpush3.bf16.msra.mxu1 %v566_v10  ;;  %p675_p8 = pnand %p674_p7, %p668_p4 }
  0x59   :  { %494 = vmatprep.subr.bf16.mxu0 %v703_v0  ;;  %514 = vmatprep.subr.bf16.mxu1 %v703_v0 }
  0x5c   :  { %495 = vmatpush3.bf16.msra.mxu0 %v559_v7  ;;  %515 = vmatpush3.bf16.msra.mxu1 %v567_v12 }
  0x5d   :  { %496 = vmatprep.subr.bf16.mxu0 %v703_v0  ;;  %516 = vmatprep.subr.bf16.mxu1 %v703_v0 }
  0x60   :  { %497 = vmatpush3.bf16.msra.mxu0 %v560_v9  ;;  %517 = vmatpush3.bf16.msra.mxu1 %v568_v15 }
  0x61   :  { %498 = vmatprep.subr.bf16.mxu0 %v703_v0  ;;  %518 = vmatprep.subr.bf16.mxu1 %v703_v0 }
  0x64   :  { %499 = vmatpush3.bf16.msra.mxu0 %v561_v11  ;;  %519 = vmatpush3.bf16.msra.mxu1 %v569_v17 }
  0x65   :  { %500 = vmatprep.subr.bf16.mxu0 %v703_v0  ;;  %520 = vmatprep.subr.bf16.mxu1 %v703_v0 }
  0x68   :  { %501 = vmatpush3.bf16.msra.mxu0 %v562_v13  ;;  %521 = vmatpush3.bf16.msra.mxu1 %v570_v18 }
  0x69   :  { %526 = vmatprep.subr.bf16.mxu0 %v703_v0 }
  0x6b   :  { %503 = vmatmul.mubr.bf16.vlgmr.msra.gmra.mrb[0].mxu0 %v99_v16 }
  0x6c   :  { %542 = vmatprep.mubr.msk.bf16.mxu0 %vm704_vm0, %v703_v0  ;;  %527 = vmatpush3.bf16.msra.mxu0 %v571_v19 }
  0x6d   :  { %528 = vmatprep.subr.bf16.mxu0 %v703_v0 }
  0x70   :  { %529 = vmatpush3.bf16.msra.mxu0 %v572_v20 }
  0x71   :  { %530 = vmatprep.subr.bf16.mxu0 %v703_v0 }
  0x74   :  { %531 = vmatpush3.bf16.msra.mxu0 %v573_v21 }
  0x75   :  { %532 = vmatprep.subr.bf16.mxu0 %v703_v0 }
  0x78   :  { %533 = vmatpush3.bf16.msra.mxu0 %v574_v22 }
  0x79   :  { %534 = vmatprep.subr.bf16.mxu0 %v703_v0 }
  0x7c   :  { %535 = vmatpush3.bf16.msra.mxu0 %v575_v23 }
  0x7d   :  { %536 = vmatprep.subr.bf16.mxu0 %v703_v0 }
  0x80   :  { %537 = vmatpush3.bf16.msra.mxu0 %v576_v24 }
  0x81   :  { %538 = vmatprep.subr.bf16.mxu0 %v703_v0 }
  0x84   :  { %539 = vmatpush3.bf16.msra.mxu0 %v577_v38 }
  0x85   :  { %540 = vmatprep.subr.bf16.mxu0 %v703_v0 }
  0x88   :  { %541 = vmatpush3.bf16.msra.mxu0 %v578_v39 }
 0x13e   :  { %v187_v31 = vpop.f32.mrb[0].mxu0 }
 0x13f   :  { %v188_v32 = vadd.f32 %v187_v31, %v104_v30  ;;  %v504_v33 = vpop.f32.mrb[1].mxu0 }
 0x140   :  { %v190_v34 = vpop.f32.mrb[2].mxu0 }
 0x141   :  { %v193_v35 = vmax.f32 %v188_v32, 0.0  ;;  %v505_v36 = vpop.f32.mrb[3].mxu0 }
 0x143   :  { %v211_v37 = vpack.c.bf16 %v193_v35, %v193_v35 }
 0x145   :  { %523 = vmatmul.mubr.bf16.vlgmr.msra.gmra.mrb[0].mxu1 %v211_v37 }
 0x218   :  { %v299_v43 = vpop.f32.mrb[0].mxu1 }
 0x219   :  { %v300_v44 = vadd.f32 %v299_v43, %v216_v42  ;;  %v524_v45 = vpop.f32.mrb[1].mxu1 }
 0x21a   :  { %v302_v46 = vpop.f32.mrb[2].mxu1 }
 0x21b   :  { %v305_v47 = vmax.f32 %v300_v44, 0.0  ;;  %v525_v48 = vpop.f32.mrb[3].mxu1 }
 0x21d   :  { %v323_v49 = vpack.c.bf16 %v305_v47, %v305_v47 }
 0x21f   :  { %543 = vmatmul.mubr.bf16.vlgmr.msra.gmra.mrb[4].mxu0 %v323_v49 }
 0x2f2   :  { %v411_v53 = vpop.f32.mrb[4].mxu0 }
 0x2f3   :  { %v412_v54 = vadd.f32 %v411_v53, %v328_v52  ;;  %v544_v55 = vpop.f32.mrb[5].mxu0 }
 0x2f4   :  { %v414_v56 = vpop.f32.mrb[6].mxu0 }
 0x2f5   :  { %417 = vst [vmem:[#allocation10] sm:$0xff] %v412_v54  ;;  %v545_v57 = vpop.f32.mrb[7].mxu0 }
 0x2f6   :  { %678 = shalt.err (!%p675_p8)
}
 0x2f7   :  { %s679_s8 = scalar_lea.hbm %s861_s7, 128 }
 0x2f8   :  { %p680_p9 = scmp.ne.s32.totalorder %s861_s7, %s679_s8  ;;  %p683_p10 = scmp.lt.u32.totalorder %s679_s8, %s861_s7 }
 0x2fa   :  { %p685_p11 = pnand %p683_p10, %p680_p9 }
 0x2fc   :  { %688 = shalt.err (!%p685_p11)
}
 0x2fd   :  { %427 = dma.vmem_to_hbm [thread:$0]  %s425_s29, 128, %s861_s7, [#allocation4]  }
 0x2fe   :  { %695 = dma.done.wait [#allocation4], 128  }
 0x2ff   :  { %696 = vsyncadd [#allocation4], 4294967168 }
 0x300   :  { %431 = vsyncpa [#allocation3], 1 }
 0x301   :  { %432 = vsyncpa [#allocation6], 1 }
 0x302   :  { %433 = vsyncpa [#allocation9], 1 }
 0x303   :  { %434 = vsyncpa [#allocation4], 1 }

</bundles_post_ra>
